<compile_context>
chip_gen: v7x
topology: tpu7x:2x2x1
jax: 0.10.0
libtpu: 0.0.40
codegen_flags: <defaults>
</compile_context>

<pallas_src>
import functools

import jax
import jax.numpy as jnp
from jax.experimental import pallas as pl
from jax.experimental.pallas import tpu as pltpu


_VMEM_CAP_BYTES = 48 * 1024 * 1024  # stay well below v7x's 64 MiB physical VMEM


def _round_up(x, m):
    return (x + m - 1) // m * m


def _pad_lane(x):
    """Round a lane dimension up to 128; bump to 256 if nearly free (v6e/v7x MXU)."""
    p128 = _round_up(x, 128)
    p256 = _round_up(x, 256)
    return p256 if p256 * 8 <= p128 * 9 else p128


def _block_vmem_bytes(tm, te, kfp, fp, hp, tiled):
    """Estimated VMEM working set (pipelined buffers + scratch), in bytes."""
    total = 2 * (tm * kfp * 2)                     # xw windows (bf16), double-buffered
    total += 2 * (fp * hp * 2)                     # w_enc (bf16)
    total += 2 * (8 * hp * 4)                      # b_enc (f32, 8-sublane padded)
    total += (3 if tiled else 2) * (hp * te * 2)   # w_proj (bf16; Buffered(3) when tiled)
    total += 2 * (8 * te * 4)                      # b_proj (f32)
    total += 2 * (tm * te * 4)                     # out (f32)
    if tiled:
        total += tm * hp * 2                       # pooled-hidden scratch (bf16)
    return total


def _audio_encoder_kernel_fused(xw_ref, w_enc_ref, b_enc_ref, w_proj_ref,
                                b_proj_ref, out_ref, *, kernel_size, f_pad):
    """1-D grid over M; w_proj fully VMEM-resident.

    xw_ref:     (tm, k*Fp) bf16  pooling windows as 128-aligned lane slabs
    w_enc_ref:  (Fp, Hp)   bf16  stand-in encoder weight (1/k folded in)
    b_enc_ref:  (1, Hp)    f32
    w_proj_ref: (Hp, Ep)   bf16  embed_projection weight ([in, out] layout)
    b_proj_ref: (1, Ep)    f32
    out_ref:    (tm, Ep)   f32
    """
    # AvgPool1d applied before the linear stand-in encoder:
    # mean-pool(x) @ W + b == sum-pool(x) @ (W/k) + b.  Window slabs are
    # 128-aligned lane slices, so pooling is k-1 full-tile VPU adds.
    pooled = xw_ref[:, 0:f_pad]
    for j in range(1, kernel_size):                # static, tiny unrolled loop
        pooled = pooled + xw_ref[:, j * f_pad:(j + 1) * f_pad]

    h = jnp.dot(pooled, w_enc_ref[...],
                preferred_element_type=jnp.float32) + b_enc_ref[...]
    out_ref[...] = (
        jnp.dot(h.astype(jnp.bfloat16), w_proj_ref[...],
                preferred_element_type=jnp.float32)
        + b_proj_ref[...]).astype(out_ref.dtype)


def _audio_encoder_kernel_tiled(xw_ref, w_enc_ref, b_enc_ref, w_proj_ref,
                                b_proj_ref, out_ref, h_ref, *, kernel_size,
                                f_pad):
    """Grid = (M tiles, E tiles); E is the inner ('arbitrary') axis.

    Same operands as the fused kernel, but w_proj/b_proj/out are E tiles and
    the pooled hidden state is cached once per M tile in bf16 VMEM scratch.
    """

    @pl.when(pl.program_id(1) == 0)
    def _():
        pooled = xw_ref[:, 0:f_pad]
        for j in range(1, kernel_size):
            pooled = pooled + xw_ref[:, j * f_pad:(j + 1) * f_pad]
        h = jnp.dot(pooled, w_enc_ref[...],
                    preferred_element_type=jnp.float32) + b_enc_ref[...]
        h_ref[...] = h.astype(h_ref.dtype)

    out_ref[...] = (
        jnp.dot(h_ref[...], w_proj_ref[...],
                preferred_element_type=jnp.float32)
        + b_proj_ref[...]).astype(out_ref.dtype)


def audio_encoder_forward(x, w_enc, b_enc, w_proj, b_proj, *,
                          kernel_size, stride, tm_max=512, te_max=1024,
                          w_proj_resident_bytes=12 * 1024 * 1024):
    B, T, F = x.shape
    H = w_enc.shape[1]
    E = w_proj.shape[1]
    if T < kernel_size:
        raise ValueError("time length T must be >= pooling kernel_size")
    t_out = (T - kernel_size) // stride + 1
    M = B * t_out

    b_enc = jnp.asarray(b_enc, jnp.float32).reshape(1, H)
    b_proj = jnp.asarray(b_proj, jnp.float32).reshape(1, E)

    # ---- lane-dense padded dims (zero padding is exact) ----------------------
    Fp = _pad_lane(F)
    Hp = _pad_lane(H)
    Ep128 = _round_up(E, 128)
    kFp = kernel_size * Fp

    # Projection residency: drop the inner E grid axis when bf16 w_proj is small.
    if Hp * Ep128 * 2 <= w_proj_resident_bytes:
        te = Ep128
    else:
        te = min(te_max, Ep128)
    Ep = _round_up(E, te)
    n_e = Ep // te
    tiled = n_e > 1

    # ---- M tiling: big tiles, VMEM-capped, even tile count for v7x's 2 TCs ---
    tm = min(tm_max, _round_up(M, 16))             # multiple of 16 (bf16 packing)
    while tm > 16 and _block_vmem_bytes(tm, te, kFp, Fp, Hp, tiled) > \
            _VMEM_CAP_BYTES - 4 * 1024 * 1024:
        tm = max(16, _round_up(tm // 2, 16))
    n_m = pl.cdiv(M, tm)
    if n_m > 1 and n_m % 2 == 1:
        cand = _round_up(max(16, -(-M // (n_m + 1))), 16)
        if pl.cdiv(M, cand) % 2 == 0 and \
                _block_vmem_bytes(cand, te, kFp, Fp, Hp, tiled) <= \
                _VMEM_CAP_BYTES - 4 * 1024 * 1024:
            tm = cand
    Mp = _round_up(M, tm)
    n_m = Mp // tm

    # ---- host-side operand prep (bf16 MXU operands, f32 biases) --------------
    # 1/kernel_size folded into w_enc:  mean(x) @ W == sum(x) @ (W / k).
    w_enc_s = (jnp.asarray(w_enc, jnp.float32) / kernel_size).astype(jnp.bfloat16)
    w_enc_p = jnp.pad(w_enc_s, ((0, Fp - F), (0, Hp - H)))
    b_enc_p = jnp.pad(b_enc, ((0, 0), (0, Hp - H)))
    w_proj_p = jnp.pad(jnp.asarray(w_proj, jnp.float32).astype(jnp.bfloat16),
                       ((0, Hp - H), (0, Ep - E)))
    b_proj_p = jnp.pad(b_proj, ((0, 0), (0, Ep - E)))

    # Pooling windows laid out as (M, k*Fp): window j occupies lane slab
    # [j*Fp, (j+1)*Fp).  For stride == kernel_size this is crop + lane-pad +
    # contiguous reshape (no transpose pass over x; a pure view when F % 128 == 0).
    x_bf = jnp.asarray(x).astype(jnp.bfloat16)
    if stride == kernel_size:
        x_p = jnp.pad(x_bf[:, :t_out * kernel_size, :],
                      ((0, 0), (0, 0), (0, Fp - F)))
        xw = x_p.reshape(M, kFp)
    else:
        x_p = jnp.pad(x_bf, ((0, 0), (0, 0), (0, Fp - F)))
        last = (t_out - 1) * stride + 1
        wins = [x_p[:, j:j + last:stride, :] for j in range(kernel_size)]
        xw = jnp.stack(wins, axis=2).reshape(M, kFp)
    xw = jnp.pad(xw, ((0, Mp - M), (0, 0)))

    # ---- compiler params / cost estimate -------------------------------------
    needed = _block_vmem_bytes(tm, te, kFp, Fp, Hp, tiled)
    vmem_limit = int(min(_VMEM_CAP_BYTES,
                         max(32 * 1024 * 1024, needed + 4 * 1024 * 1024)))

    flops = 2 * Mp * Fp * Hp + 2 * Mp * Hp * Ep + (kernel_size - 1) * Mp * Fp
    restream = n_m if tiled else 1
    bytes_accessed = (xw.size * 2 + w_enc_p.size * 2 + b_enc_p.size * 4
                      + w_proj_p.size * 2 * restream
                      + b_proj_p.size * 4 * restream
                      + Mp * Ep * 4)
    cost = pl.CostEstimate(flops=int(flops), transcendentals=0,
                           bytes_accessed=int(bytes_accessed))

    if not tiled:
        kernel = functools.partial(_audio_encoder_kernel_fused,
                                   kernel_size=kernel_size, f_pad=Fp)
        grid_spec = pltpu.PrefetchScalarGridSpec(
            num_scalar_prefetch=0,
            grid=(n_m,),
            in_specs=[
                pl.BlockSpec((tm, kFp), lambda m: (m, 0)),   # xw
                pl.BlockSpec((Fp, Hp), lambda m: (0, 0)),    # w_enc
                pl.BlockSpec((1, Hp), lambda m: (0, 0)),     # b_enc
                pl.BlockSpec((Hp, Ep), lambda m: (0, 0)),    # w_proj (resident)
                pl.BlockSpec((1, Ep), lambda m: (0, 0)),     # b_proj
            ],
            out_specs=pl.BlockSpec((tm, Ep), lambda m: (m, 0)),
        )
        dim_sem = ("parallel",)
    else:
        kernel = functools.partial(_audio_encoder_kernel_tiled,
                                   kernel_size=kernel_size, f_pad=Fp)
        grid_spec = pltpu.PrefetchScalarGridSpec(
            num_scalar_prefetch=0,
            grid=(n_m, n_e),
            in_specs=[
                pl.BlockSpec((tm, kFp), lambda m, e: (m, 0)),   # xw
                pl.BlockSpec((Fp, Hp), lambda m, e: (0, 0)),    # w_enc
                pl.BlockSpec((1, Hp), lambda m, e: (0, 0)),     # b_enc
                pl.BlockSpec((Hp, te), lambda m, e: (0, e),     # w_proj stream
                             pipeline_mode=pl.Buffered(3)),
                pl.BlockSpec((1, te), lambda m, e: (0, e)),     # b_proj
            ],
            out_specs=pl.BlockSpec((tm, te), lambda m, e: (m, e)),
            scratch_shapes=[pltpu.VMEM((tm, Hp), jnp.bfloat16)],
        )
        dim_sem = ("parallel", "arbitrary")

    out_padded = pl.pallas_call(
        kernel,
        out_shape=jax.ShapeDtypeStruct((Mp, Ep), jnp.float32),
        grid_spec=grid_spec,
        compiler_params=pltpu.CompilerParams(
            dimension_semantics=dim_sem,
            vmem_limit_bytes=vmem_limit),
        cost_estimate=cost,
    )(xw, w_enc_p, b_enc_p, w_proj_p, b_proj_p)

    # Padded rows/cols (containing bias-only garbage) are sliced away here.
    return out_padded[:M, :E].reshape(B, t_out, E)


def reference_forward(x, w_enc, b_enc, w_proj, b_proj, *, kernel_size, stride):
    """Pure-JAX f32 reference matching the PyTorch semantics (encoder -> pool -> proj)."""
    h = jnp.einsum("btf,fh->bth", x, w_enc) + b_enc           # last_hidden_state
    B, T, H = h.shape
    t_out = (T - kernel_size) // stride + 1
    pooled = jnp.stack(
        [h[:, t * stride:t * stride + kernel_size, :].mean(axis=1)
         for t in range(t_out)], axis=1)                       # AvgPool1d
    return jnp.einsum("bth,he->bte", pooled, w_proj) + b_proj  # embed_projection


if __name__ == "__main__":
    # Small, config-consistent shapes:
    #   batch B=2, time T=16, input feature F=32,
    #   encoder hidden H=32, llm_embedding_channels E=32,
    #   pooling kernel_size=2, stride=2  -> Tout=8
    B, T, F, H, E = 2, 16, 32, 32, 32
    kernel_size, stride = 2, 2

    key = jax.random.PRNGKey(0)
    k1, k2, k3, k4, k5 = jax.random.split(key, 5)
    x = jax.random.normal(k1, (B, T, F), dtype=jnp.float32)
    w_enc = jax.random.normal(k2, (F, H), dtype=jnp.float32) * 0.1
    b_enc = jax.random.normal(k3, (1, H), dtype=jnp.float32) * 0.1
    w_proj = jax.random.normal(k4, (H, E), dtype=jnp.float32) * 0.1
    b_proj = jax.random.normal(k5, (1, E), dtype=jnp.float32) * 0.1

    out = audio_encoder_forward(
        x, w_enc, b_enc, w_proj, b_proj,
        kernel_size=kernel_size, stride=stride)
    out = jax.block_until_ready(out)

    ref = reference_forward(
        x, w_enc, b_enc, w_proj, b_proj,
        kernel_size=kernel_size, stride=stride)

    assert out.shape == (B, (T - kernel_size) // stride + 1, E), out.shape
    # bf16 MXU operands with f32 accumulation vs. pure-f32 reference.
    assert jnp.allclose(out, ref, atol=5e-2, rtol=5e-2), "mismatch vs reference"
    print("KERNEL_OK")
</pallas_src>

<mosaic_0001>
module attributes {stable_mosaic.version = 11 : i64} {
  func.func @_audio_encoder_kernel_fused(%arg0: i32, %arg1: memref<16x256xbf16, #tpu.memory_space<vmem>>, %arg2: memref<128x128xbf16, #tpu.memory_space<vmem>>, %arg3: memref<1x128xf32, #tpu.memory_space<vmem>>, %arg4: memref<128x128xbf16, #tpu.memory_space<vmem>>, %arg5: memref<1x128xf32, #tpu.memory_space<vmem>>, %arg6: memref<16x128xf32, #tpu.memory_space<vmem>>) attributes {dimension_semantics = [#tpu.dimension_semantics<parallel>], iteration_bounds = array<i64: 1>, scalar_prefetch = 0 : i64, scratch_operands = 0 : i64, tpu.core_type = #tpu.core_type<tc>, window_params = [{transform_indices = @transform_0, window_bounds = array<i64: 16, 256>}, {pipeline_mode = #tpu.pipeline_mode<synchronous>, transform_indices = @transform_1, window_bounds = array<i64: 128, 128>}, {pipeline_mode = #tpu.pipeline_mode<synchronous>, transform_indices = @transform_2, window_bounds = array<i64: 1, 128>}, {pipeline_mode = #tpu.pipeline_mode<synchronous>, transform_indices = @transform_3, window_bounds = array<i64: 128, 128>}, {pipeline_mode = #tpu.pipeline_mode<synchronous>, transform_indices = @transform_4, window_bounds = array<i64: 1, 128>}, {transform_indices = @transform_5, window_bounds = array<i64: 16, 128>}]} {
    %c0 = arith.constant 0 : index
    %c0_0 = arith.constant 0 : index
    %0 = vector.load %arg1[%c0, %c0_0] : memref<16x256xbf16, #tpu.memory_space<vmem>>, vector<16x128xbf16>
    %c0_1 = arith.constant 0 : index
    %c128 = arith.constant 128 : index
    %1 = vector.load %arg1[%c0_1, %c128] : memref<16x256xbf16, #tpu.memory_space<vmem>>, vector<16x128xbf16>
    %2 = arith.addf %0, %1 : vector<16x128xbf16>
    %c0_2 = arith.constant 0 : index
    %c0_3 = arith.constant 0 : index
    %3 = vector.load %arg2[%c0_2, %c0_3] : memref<128x128xbf16, #tpu.memory_space<vmem>>, vector<128x128xbf16>
    %cst = arith.constant dense<0.000000e+00> : vector<16x128xf32>
    %4 = tpu.matmul %2, %3, %cst {dimension_numbers = #tpu.dot_dimension_numbers<[1], [0], [0], [1], [0, 0, 1, 1], [], []>} : vector<16x128xbf16>, vector<128x128xbf16>, vector<16x128xf32> -> vector<16x128xf32>
    %c0_4 = arith.constant 0 : index
    %c0_5 = arith.constant 0 : index
    %5 = vector.load %arg3[%c0_4, %c0_5] : memref<1x128xf32, #tpu.memory_space<vmem>>, vector<1x128xf32>
    %6 = vector.broadcast %5 : vector<1x128xf32> to vector<16x128xf32>
    %7 = arith.addf %4, %6 : vector<16x128xf32>
    %8 = arith.truncf %7 : vector<16x128xf32> to vector<16x128xbf16>
    %c0_6 = arith.constant 0 : index
    %c0_7 = arith.constant 0 : index
    %9 = vector.load %arg4[%c0_6, %c0_7] : memref<128x128xbf16, #tpu.memory_space<vmem>>, vector<128x128xbf16>
    %cst_8 = arith.constant dense<0.000000e+00> : vector<16x128xf32>
    %10 = tpu.matmul %8, %9, %cst_8 {dimension_numbers = #tpu.dot_dimension_numbers<[1], [0], [0], [1], [0, 0, 1, 1], [], []>} : vector<16x128xbf16>, vector<128x128xbf16>, vector<16x128xf32> -> vector<16x128xf32>
    %c0_9 = arith.constant 0 : index
    %c0_10 = arith.constant 0 : index
    %11 = vector.load %arg5[%c0_9, %c0_10] : memref<1x128xf32, #tpu.memory_space<vmem>>, vector<1x128xf32>
    %12 = vector.broadcast %11 : vector<1x128xf32> to vector<16x128xf32>
    %13 = arith.addf %10, %12 : vector<16x128xf32>
    %c0_11 = arith.constant 0 : index
    %c0_12 = arith.constant 0 : index
    %14 = vector.load %arg6[%c0_11, %c0_12] : memref<16x128xf32, #tpu.memory_space<vmem>>, vector<16x128xf32>
    tpu.vector_store %arg6[%c0_11, %c0_12], %13 {strides = array<i32>} : memref<16x128xf32, #tpu.memory_space<vmem>>, vector<16x128xf32>,
    return
  }
  func.func @transform_0(%arg0: i32) -> (i32, i32) {
    %c0_i32 = arith.constant 0 : i32
    %c0_i32_0 = arith.constant 0 : i32
    return %arg0, %c0_i32 : i32, i32
  }
  func.func @transform_1(%arg0: i32) -> (i32, i32) {
    %c0_i32 = arith.constant 0 : i32
    %c0_i32_0 = arith.constant 0 : i32
    %c0_i32_1 = arith.constant 0 : i32
    return %c0_i32, %c0_i32_0 : i32, i32
  }
  func.func @transform_2(%arg0: i32) -> (i32, i32) {
    %c0_i32 = arith.constant 0 : i32
    %c0_i32_0 = arith.constant 0 : i32
    %c0_i32_1 = arith.constant 0 : i32
    return %c0_i32, %c0_i32_0 : i32, i32
  }
  func.func @transform_3(%arg0: i32) -> (i32, i32) {
    %c0_i32 = arith.constant 0 : i32
    %c0_i32_0 = arith.constant 0 : i32
    %c0_i32_1 = arith.constant 0 : i32
    return %c0_i32, %c0_i32_0 : i32, i32
  }
  func.func @transform_4(%arg0: i32) -> (i32, i32) {
    %c0_i32 = arith.constant 0 : i32
    %c0_i32_0 = arith.constant 0 : i32
    %c0_i32_1 = arith.constant 0 : i32
    return %c0_i32, %c0_i32_0 : i32, i32
  }
  func.func @transform_5(%arg0: i32) -> (i32, i32) {
    %c0_i32 = arith.constant 0 : i32
    %c0_i32_0 = arith.constant 0 : i32
    return %arg0, %c0_i32 : i32, i32
  }
}

</mosaic_0001>

<bundles_post_ra>
// kernel: tpu_custom_call.1
= control target key start
LH: loop header
LB: loop body
LE: loop exit
PB: predicated region body
PF: predicated region fallthrough
CT: control target
= control target key end

     0   :  { %10 = vsyncpa [#allocation3], 0  ;;  %s623_s0 = inlined_call_operand.hbm [shape: bf16[16,256], index: 0, kind: input, shape index: {}]   ;;  %s624_s1 = inlined_call_operand.hbm [shape: bf16[128,128], index: 1, kind: input, shape index: {}]   ;;  %s625_s2 = inlined_call_operand.vmem [shape: f32[1,128], index: 2, kind: input, shape index: {}]   ;;  %s626_s3 = inlined_call_operand.hbm [shape: bf16[128,128], index: 3, kind: input, shape index: {}]   ;;  %s627_s4 = inlined_call_operand.vmem [shape: f32[1,128], index: 4, kind: input, shape index: {}]   ;;  %s628_s5 = inlined_call_operand.hbm [shape: f32[16,128], index: 5, kind: output, shape index: {}]  }
   0x1   :  { %11 = vsyncpa [#allocation6], 0 }
   0x2   :  { %12 = vsyncpa [#allocation4], 0  ;;  %s517_s18 = smov [#allocation5]   ;;  %s423_s22 = scalar_lea.hbm %s624_s1, 1024 }
   0x3   :  { %s30_s19 = sshll.u32 %s517_s18, 4  ;;  %p424_p0 = scmp.ne.s32.totalorder %s624_s1, %s423_s22  ;;  %s31_s19 = int_to_ptr.vmem [resolvable:$true] %s30_s19 }
   0x4   :  { %p427_p1 = scmp.lt.u32.totalorder %s423_s22, %s624_s1 }
   0x6   :  { %p429_p2 = pnand %p427_p1, %p424_p0 }
   0x8   :  { %432 = shalt.err (!%p429_p2)
}
   0x9   :  { %s433_s27 = scalar_lea.vmem %s31_s19, 1024  ;;  %p438_p4 = scmp.lt.s32.totalorder %s31_s19, %s31_s19 }
   0xa   :  { %p434_p3 = scmp.ne.s32.totalorder %s31_s19, %s433_s27  ;;  %p439_p5 = scmp.lt.s32.totalorder %s433_s27, %s433_s27 }
   0xc   :  { %p440_p6 = por %p439_p5, %p438_p4 }
   0xe   :  { %p441_p7 = pnand %p440_p6, %p434_p3 }
  0x10   :  { %444 = shalt.err (!%p441_p7)
}
  0x11   :  { %s518_s28 = smov 64   ;;  %s519_s29 = smov 4  }
  0x12   :  { %36 = dma.hbm_to_vmem [thread:$0]  %s624_s1, 1024, %s31_s19, [#allocation6], %s518_s28, %s518_s28, %s519_s29  }
  0x13   :  { %s520_s7 = smov [#allocation2]   ;;  %s445_s11 = scalar_lea.hbm %s623_s0, 256 }
  0x14   :  { %s18_s8 = sshll.u32 %s520_s7, 4  ;;  %p446_p8 = scmp.ne.s32.totalorder %s623_s0, %s445_s11  ;;  %s19_s8 = int_to_ptr.vmem [resolvable:$true] %s18_s8 }
  0x15   :  { %p449_p9 = scmp.lt.u32.totalorder %s445_s11, %s623_s0 }
  0x17   :  { %p451_p10 = pnand %p449_p9, %p446_p8 }
  0x19   :  { %454 = shalt.err (!%p451_p10)
}
  0x1a   :  { %s455_s16 = scalar_lea.vmem %s19_s8, 256  ;;  %p460_p12 = scmp.lt.s32.totalorder %s19_s8, %s19_s8 }
  0x1b   :  { %p456_p11 = scmp.ne.s32.totalorder %s19_s8, %s455_s16  ;;  %p461_p13 = scmp.lt.s32.totalorder %s455_s16, %s455_s16 }
  0x1d   :  { %p462_p0 = por %p461_p13, %p460_p12 }
  0x1f   :  { %p463_p1 = pnand %p462_p0, %p456_p11 }
  0x21   :  { %466 = shalt.err (!%p463_p1)
}
  0x22   :  { %s521_s1 = smov 128   ;;  %s522_s17 = smov 8  }
  0x23   :  { %24 = dma.hbm_to_vmem [thread:$0]  %s623_s0, 256, %s19_s8, [#allocation3], %s521_s1, %s521_s1, %s522_s17  }
  0x24   :  { %s523_s20 = smov [#allocation7]   ;;  %s467_s24 = scalar_lea.hbm %s626_s3, 1024 }
  0x25   :  { %s44_s21 = sshll.u32 %s523_s20, 4  ;;  %p468_p2 = scmp.ne.s32.totalorder %s626_s3, %s467_s24  ;;  %s45_s21 = int_to_ptr.vmem [resolvable:$true] %s44_s21 }
  0x26   :  { %p471_p3 = scmp.lt.u32.totalorder %s467_s24, %s626_s3 }
  0x28   :  { %p473_p4 = pnand %p471_p3, %p468_p2 }
  0x2a   :  { %476 = shalt.err (!%p473_p4)
}
  0x2b   :  { %s477_s6 = scalar_lea.vmem %s45_s21, 1024  ;;  %p482_p6 = scmp.lt.s32.totalorder %s45_s21, %s45_s21 }
  0x2c   :  { %p478_p5 = scmp.ne.s32.totalorder %s45_s21, %s477_s6  ;;  %p483_p7 = scmp.lt.s32.totalorder %s477_s6, %s477_s6 }
  0x2e   :  { %p484_p8 = por %p483_p7, %p482_p6 }
  0x30   :  { %p485_p9 = pnand %p484_p8, %p478_p5 }
  0x32   :  { %488 = shalt.err (!%p485_p9)
}
  0x33   :  { %50 = dma.hbm_to_vmem [thread:$0]  %s626_s3, 1024, %s45_s21, [#allocation6], %s518_s28, %s518_s28, %s519_s29  }
  0x34   :  { %511 = dma.done.wait [#allocation3], 256  }
  0x35   :  { %512 = vsyncadd [#allocation3], 4294967040 }
  0x36   :  { %513 = dma.done.wait [#allocation6], 2048  }
  0x37   :  { %514 = vsyncadd [#allocation6], 4294965248  ;;  %v524_v0 = vmov 0.0   ;;  %vm525_vm0 = vmmov 0   ;;  %v407_v1 = vld [vmem:[#allocation5] sm:$0xff]   ;;  %v408_v2 = vld [vmem:[#allocation5 + $0x8] sm:$0xff]  }
  0x38   :  { %357 = vmatprep.subr.bf16.mxu0 %v524_v0  ;;  %373 = vmatprep.mubr.msk.bf16.mxu0 %vm525_vm0, %v524_v0  ;;  %v409_v3 = vld [vmem:[#allocation5 + $0x10] sm:$0xff]   ;;  %v410_v4 = vld [vmem:[#allocation5 + $0x18] sm:$0xff]   ;;  %v415_v5 = vld [vmem:[#allocation7] sm:$0xff]   ;;  %s526_s9 = smov [#allocation8]  }
  0x39   :  { %377 = vmatprep.subr.bf16.mxu1 %v524_v0  ;;  %393 = vmatprep.mubr.msk.bf16.mxu1 %vm525_vm0, %v524_v0  ;;  %v416_v6 = vld [vmem:[#allocation7 + $0x8] sm:$0xff]   ;;  %v411_v7 = vld [vmem:[#allocation5 + $0x20] sm:$0xff]   ;;  %v417_v8 = vld [vmem:[#allocation7 + $0x10] sm:$0xff]   ;;  %s307_s10 = sshll.u32 %s526_s9, 4  ;;  %s308_s10 = int_to_ptr.vmem [resolvable:$true] %s307_s10 }
  0x3a   :  { %358 = vmatpush3.bf16.msra.mxu0 %v407_v1  ;;  %378 = vmatpush3.bf16.msra.mxu1 %v415_v5  ;;  %v412_v9 = vld [vmem:[#allocation5 + $0x28] sm:$0xff]   ;;  %v418_v10 = vld [vmem:[#allocation7 + $0x18] sm:$0xff]   ;;  %v413_v11 = vld [vmem:[#allocation5 + $0x30] sm:$0xff]   ;;  %p494_p11 = scmp.lt.s32.totalorder %s308_s10, %s308_s10 }
  0x3b   :  { %359 = vmatprep.subr.bf16.mxu0 %v524_v0  ;;  %379 = vmatprep.subr.bf16.mxu1 %v524_v0  ;;  %v63_v12 = vld [vmem:[#allocation2] sm:$0xf]  ;;  %v64_v13 = vld [vmem:[#allocation2 + $0x8] sm:$0xf]  ;;  %v65_v14 = vld [vmem:[#allocation2 + $0x4] sm:$0xf] }
  0x3c   :  { %v66_v15 = vld [vmem:[#allocation2 + $0xc] sm:$0xf]  ;;  %v419_v16 = vld [vmem:[#allocation7 + $0x20] sm:$0xff]   ;;  %v67_v17 = vadd.bf16 %v65_v14, %v63_v12  ;;  %v420_v20 = vld [vmem:[#allocation7 + $0x28] sm:$0xff]  }
  0x3d   :  { %v68_v18 = vadd.bf16 %v66_v15, %v64_v13  ;;  %v414_v19 = vld [vmem:[#allocation5 + $0x38] sm:$0xff]   ;;  %v421_v22 = vld [vmem:[#allocation7 + $0x30] sm:$0xff]  }
  0x3e   :  { %360 = vmatpush3.bf16.msra.mxu0 %v408_v2  ;;  %380 = vmatpush3.bf16.msra.mxu1 %v416_v6  ;;  %v422_v23 = vld [vmem:[#allocation7 + $0x38] sm:$0xff]   ;;  %v320_v24 = vld [vmem:[%s625_s2] ss:$0 sm:$0xff]  ;;  %s489_s2 = scalar_lea.vmem %s308_s10, 256 }
  0x3f   :  { %361 = vmatprep.subr.bf16.mxu0 %v524_v0  ;;  %381 = vmatprep.subr.bf16.mxu1 %v524_v0  ;;  %v321_v21 = vcombine.low %v67_v17, %v68_v18  ;;  %v330_v32 = vld [vmem:[%s627_s4] ss:$0 sm:$0xff]  ;;  %p490_p10 = scmp.ne.s32.totalorder %s308_s10, %s489_s2  ;;  %p495_p12 = scmp.lt.s32.totalorder %s489_s2, %s489_s2 }
  0x41   :  { %p496_p13 = por %p495_p12, %p494_p11 }
  0x42   :  { %362 = vmatpush3.bf16.msra.mxu0 %v409_v3  ;;  %382 = vmatpush3.bf16.msra.mxu1 %v417_v8 }
  0x43   :  { %363 = vmatprep.subr.bf16.mxu0 %v524_v0  ;;  %383 = vmatprep.subr.bf16.mxu1 %v524_v0  ;;  %p497_p0 = pnand %p496_p13, %p490_p10 }
  0x46   :  { %364 = vmatpush3.bf16.msra.mxu0 %v410_v4  ;;  %384 = vmatpush3.bf16.msra.mxu1 %v418_v10 }
  0x47   :  { %365 = vmatprep.subr.bf16.mxu0 %v524_v0  ;;  %385 = vmatprep.subr.bf16.mxu1 %v524_v0 }
  0x4a   :  { %366 = vmatpush3.bf16.msra.mxu0 %v411_v7  ;;  %386 = vmatpush3.bf16.msra.mxu1 %v419_v16 }
  0x4b   :  { %367 = vmatprep.subr.bf16.mxu0 %v524_v0  ;;  %387 = vmatprep.subr.bf16.mxu1 %v524_v0 }
  0x4e   :  { %368 = vmatpush3.bf16.msra.mxu0 %v412_v9  ;;  %388 = vmatpush3.bf16.msra.mxu1 %v420_v20 }
  0x4f   :  { %369 = vmatprep.subr.bf16.mxu0 %v524_v0  ;;  %389 = vmatprep.subr.bf16.mxu1 %v524_v0 }
  0x52   :  { %370 = vmatpush3.bf16.msra.mxu0 %v413_v11  ;;  %390 = vmatpush3.bf16.msra.mxu1 %v421_v22 }
  0x53   :  { %371 = vmatprep.subr.bf16.mxu0 %v524_v0  ;;  %391 = vmatprep.subr.bf16.mxu1 %v524_v0 }
  0x56   :  { %372 = vmatpush3.bf16.msra.mxu0 %v414_v19  ;;  %392 = vmatpush3.bf16.msra.mxu1 %v422_v23 }
  0x59   :  { %374 = vmatmul.mubr.bf16.vlgmr.msra.gmra.mrb[0].mxu0 %v321_v21 }
 0x12c   :  { %v180_v25 = vpop.f32.mrb[0].mxu0 }
 0x12d   :  { %v375_v26 = vpop.f32.mrb[1].mxu0  ;;  %v181_v28 = vadd.f32 %v320_v24, %v180_v25 }
 0x12e   :  { %v183_v27 = vpop.f32.mrb[2].mxu0 }
 0x12f   :  { %v184_v29 = vadd.f32 %v320_v24, %v183_v27  ;;  %v376_v30 = vpop.f32.mrb[3].mxu0 }
 0x131   :  { %v187_v31 = vpack.c.bf16 %v184_v29, %v181_v28 }
 0x133   :  { %394 = vmatmul.mubr.bf16.vlgmr.msra.gmra.mrb[0].mxu1 %v187_v31 }
 0x206   :  { %v293_v33 = vpop.f32.mrb[0].mxu1 }
 0x207   :  { %v294_v34 = vadd.f32 %v330_v32, %v293_v33  ;;  %v395_v35 = vpop.f32.mrb[1].mxu1 }
 0x208   :  { %v296_v36 = vpop.f32.mrb[2].mxu1 }
 0x209   :  { %300 = vst [vmem:[#allocation8] sm:$0xff] %v294_v34  ;;  %v297_v37 = vadd.f32 %v330_v32, %v296_v36  ;;  %v396_v38 = vpop.f32.mrb[3].mxu1 }
 0x20b   :  { %301 = vst [vmem:[#allocation8 + $0x8] sm:$0xff] %v297_v37 }
 0x20c   :  { %500 = shalt.err (!%p497_p0)
}
 0x20d   :  { %s501_s12 = scalar_lea.hbm %s628_s5, 256 }
 0x20e   :  { %p502_p1 = scmp.ne.s32.totalorder %s628_s5, %s501_s12  ;;  %p505_p2 = scmp.lt.u32.totalorder %s501_s12, %s628_s5 }
 0x210   :  { %p507_p3 = pnand %p505_p2, %p502_p1 }
 0x212   :  { %510 = shalt.err (!%p507_p3)
}
 0x213   :  { %313 = dma.vmem_to_hbm [thread:$0]  %s308_s10, 256, %s628_s5, [#allocation4], %s521_s1, %s521_s1, %s522_s17  }
 0x214   :  { %515 = dma.done.wait [#allocation4], 256  }
 0x215   :  { %516 = vsyncadd [#allocation4], 4294967040 }
 0x216   :  { %317 = vsyncpa [#allocation3], 1 }
 0x217   :  { %318 = vsyncpa [#allocation6], 1 }
 0x218   :  { %319 = vsyncpa [#allocation4], 1 }

</bundles_post_ra>
